<compile_context>
chip_gen: v7x
topology: tpu7x:2x2x1
jax: 0.10.0
libtpu: 0.0.40
codegen_flags: <defaults>
</compile_context>

<pallas_src>
import functools
import math

import jax
import jax.numpy as jnp
from jax.experimental import pallas as pl
from jax.experimental.pallas import tpu as pltpu

MXU_BF16 = True                      # single-pass MXU: bf16 operands, f32 accumulation
_VMEM_LIMIT = 48 * 1024 * 1024       # explicit scoped VMEM limit (safe on v5e/v6e/v7x)
_MASK_FILL = -1000000000.0
_HIGHEST = jax.lax.Precision.HIGHEST  # reference path only


# ---------------------------------------------------------------------------
# Linear:  y = x @ W^T + b   (torch nn.Linear stores W as (Dout, Din))
# ---------------------------------------------------------------------------
def _linear_kernel(x_ref, w_ref, b_ref, o_ref):
    # x_ref: (TN, Din) streamed row tile (f32 in HBM, cast for the MXU)
    # w_ref: (Din, Dout) resident, pre-transposed (bf16 when MXU_BF16) -> lane-dense out
    # b_ref: (1, Dout) resident f32
    x = x_ref[...].astype(w_ref.dtype)
    y = jnp.dot(x, w_ref[...], preferred_element_type=jnp.float32)
    o_ref[...] = (y + b_ref[...]).astype(o_ref.dtype)


def linear_forward(x2, weight, bias, *, rows_per_tile=512):
    """x2: (N, Din) f32; weight: (Dout, Din); bias: (Dout,). Returns (N, Dout) f32."""
    N, Din = x2.shape
    Dout = weight.shape[0]
    w_t = weight.T.astype(jnp.bfloat16) if MXU_BF16 else weight.T   # (Din, Dout)
    b2 = bias.reshape(1, Dout).astype(jnp.float32)

    if N <= rows_per_tile:
        tn, n_pad = N, N                       # single full-extent block (always legal)
    else:
        tn = rows_per_tile                     # multiple of 8
        n_pad = -(-N // tn) * tn
        if n_pad != N:                         # pad tail tile; padded rows discarded
            x2 = jnp.pad(x2, ((0, n_pad - N), (0, 0)))

    w_bytes = Din * Dout * (2 if MXU_BF16 else 4)
    out = pl.pallas_call(
        _linear_kernel,
        out_shape=jax.ShapeDtypeStruct((n_pad, Dout), jnp.float32),
        grid=(n_pad // tn,),
        in_specs=[
            pl.BlockSpec((tn, Din), lambda i: (i, 0)),     # streamed rows
            pl.BlockSpec((Din, Dout), lambda i: (0, 0)),   # resident weight
            pl.BlockSpec((1, Dout), lambda i: (0, 0)),     # resident bias
        ],
        out_specs=pl.BlockSpec((tn, Dout), lambda i: (i, 0)),
        compiler_params=pltpu.CompilerParams(
            dimension_semantics=("parallel",),
            vmem_limit_bytes=_VMEM_LIMIT),
        cost_estimate=pl.CostEstimate(
            flops=2 * n_pad * Din * Dout,
            transcendentals=0,
            bytes_accessed=4 * n_pad * Din + w_bytes + 4 * Dout + 4 * n_pad * Dout),
    )(x2, w_t, b2)
    # TODO(synk): for very large d_model, add Dout (and K-reduction) grid axes and
    # pl.Buffered(1) on the resident weight/bias blocks instead of full residency.
    return out[:N] if n_pad != N else out


# ---------------------------------------------------------------------------
# Attention core: one (batch, Sq-tile) per grid step; heads split via static
# lane slices; output written in concat-head (lane-dense) layout.
# ---------------------------------------------------------------------------
def _attn_body(bias, q, k, v, o_ref, sc_ref, *, heads, d_k, scale):
    # q: (Tq, D); k, v: (Sk, D); bias: (Tq, Sk) additive f32 or None.
    cdt = jnp.bfloat16 if MXU_BF16 else q.dtype
    outs = []
    for hd in range(heads):                    # unrolled static head loop
        lo = hd * d_k
        qh = q[:, lo:lo + d_k].astype(cdt)
        kh = k[:, lo:lo + d_k].astype(cdt)
        vh = v[:, lo:lo + d_k].astype(cdt)
        s = jax.lax.dot_general(qh, kh, (((1,), (1,)), ((), ())),
                                preferred_element_type=jnp.float32) * scale
        if bias is not None:
            s = s + bias
        m = jnp.max(s, axis=-1, keepdims=True)
        e = jnp.exp(s - m)
        denom = jnp.sum(e, axis=-1, keepdims=True)
        if hasattr(pl, "reciprocal"):
            p = e * pl.reciprocal(denom, approx=True)   # divide -> EUP slot
        else:
            p = e / denom
        sc_ref[0, hd] = p.astype(sc_ref.dtype)
        outs.append(jnp.dot(p.astype(cdt), vh, preferred_element_type=jnp.float32))
    # concat-head layout: lane width = d_model (unmasked vst when d_model % 128 == 0)
    o_ref[0] = jnp.concatenate(outs, axis=-1).astype(o_ref.dtype)


def _attn_kernel(q_ref, k_ref, v_ref, o_ref, sc_ref, *, heads, d_k, scale):
    _attn_body(None, q_ref[0], k_ref[0], v_ref[0], o_ref, sc_ref,
               heads=heads, d_k=d_k, scale=scale)


def _attn_kernel_masked(mask_ref, q_ref, k_ref, v_ref, o_ref, sc_ref, *,
                        heads, d_k, scale):
    keep = mask_ref[0].astype(jnp.float32)          # (Tq, Sk); 1 = keep, 0 = masked
    bias = (1.0 - keep) * _MASK_FILL                # 0 where keep, -1e9 where masked
    _attn_body(bias, q_ref[0], k_ref[0], v_ref[0], o_ref, sc_ref,
               heads=heads, d_k=d_k, scale=scale)


def attention_forward(qp, kp, vp, heads, d_k, mask=None, *, max_q_tile=512):
    """qp: (bs, Sq, d_model), kp/vp: (bs, Sk, d_model) f32. mask: optional
    (bs, Sq, Sk) (0 = masked, torch masked_fill semantics).
    Returns (concat-head output (bs, Sq, d_model) f32, scores (bs, h, Sq, Sk) f32)."""
    bs, sq, d_model = qp.shape
    sk = kp.shape[1]
    scale = 1.0 / math.sqrt(d_k)

    mask_bf = None
    if mask is not None:
        mask_bf = jnp.broadcast_to((mask != 0).astype(jnp.bfloat16), (bs, sq, sk))

    if sq <= max_q_tile:
        tq, sq_pad = sq, sq                    # single full-extent Sq tile
    else:
        tq = max_q_tile                        # multiple of 8
        sq_pad = -(-sq // tq) * tq
        if sq_pad != sq:
            qp = jnp.pad(qp, ((0, 0), (0, sq_pad - sq), (0, 0)))
            if mask_bf is not None:
                mask_bf = jnp.pad(mask_bf, ((0, 0), (0, sq_pad - sq), (0, 0)),
                                  constant_values=1.0)
    n_q = sq_pad // tq

    qkv_specs = [
        pl.BlockSpec((1, tq, d_model), lambda b, qi: (b, qi, 0)),
        pl.BlockSpec((1, sk, d_model), lambda b, qi: (b, 0, 0)),
        pl.BlockSpec((1, sk, d_model), lambda b, qi: (b, 0, 0)),
    ]
    out_specs = (
        pl.BlockSpec((1, tq, d_model), lambda b, qi: (b, qi, 0)),
        pl.BlockSpec((1, heads, tq, sk), lambda b, qi: (b, 0, qi, 0)),
    )
    out_shape = (
        jax.ShapeDtypeStruct((bs, sq_pad, d_model), jnp.float32),
        jax.ShapeDtypeStruct((bs, heads, sq_pad, sk), jnp.float32),
    )
    # TODO(synk): for v5e store the scores output in bf16 (largest writeback stream).
    cost = pl.CostEstimate(
        flops=4 * bs * heads * sq_pad * sk * d_k,
        transcendentals=bs * heads * sq_pad * sk,
        bytes_accessed=4 * bs * (2 * sq_pad * d_model + 2 * sk * d_model
                                 + heads * sq_pad * sk))
    cparams = pltpu.CompilerParams(
        dimension_semantics=("parallel", "parallel"),
        vmem_limit_bytes=_VMEM_LIMIT)
    kw = dict(heads=heads, d_k=d_k, scale=scale)

    if mask_bf is None:
        o, sc = pl.pallas_call(
            functools.partial(_attn_kernel, **kw),
            out_shape=out_shape, grid=(bs, n_q),
            in_specs=qkv_specs, out_specs=out_specs,
            compiler_params=cparams, cost_estimate=cost,
        )(qp, kp, vp)
    else:
        in_specs = [pl.BlockSpec((1, tq, sk), lambda b, qi: (b, qi, 0))] + qkv_specs
        o, sc = pl.pallas_call(
            functools.partial(_attn_kernel_masked, **kw),
            out_shape=out_shape, grid=(bs, n_q),
            in_specs=in_specs, out_specs=out_specs,
            compiler_params=cparams, cost_estimate=cost,
        )(mask_bf, qp, kp, vp)

    if sq_pad != sq:
        o = o[:, :sq]
        sc = sc[:, :, :sq]
    return o, sc


# ---------------------------------------------------------------------------
# Full MultiHeadAttention forward
# ---------------------------------------------------------------------------
def multi_head_attention_forward(q, k, v, params, heads, mask=None):
    """q/k/v: (bs, seq, d_model). Returns (output (bs, seq, d_model),
    scores (bs, heads, seq_q, seq_k)) — same as the torch module (eval mode)."""
    bs, sq, d_model = q.shape
    sk = k.shape[1]
    d_k = d_model // heads

    # Fused Q/K/V projection (one wide lane-dense matmul) when inputs coincide.
    if q is k and k is v:
        w = jnp.concatenate([params["wq"], params["wk"], params["wv"]], axis=0)
        b = jnp.concatenate([params["bq"], params["bk"], params["bv"]], axis=0)
        qkv = linear_forward(q.reshape(bs * sq, d_model), w, b)        # (N, 3D)
        qp = qkv[:, :d_model]
        kp = qkv[:, d_model:2 * d_model]
        vp = qkv[:, 2 * d_model:]
    elif k is v:
        w = jnp.concatenate([params["wk"], params["wv"]], axis=0)
        b = jnp.concatenate([params["bk"], params["bv"]], axis=0)
        kv = linear_forward(k.reshape(bs * sk, d_model), w, b)         # (N, 2D)
        kp, vp = kv[:, :d_model], kv[:, d_model:]
        qp = linear_forward(q.reshape(bs * sq, d_model), params["wq"], params["bq"])
    else:
        qp = linear_forward(q.reshape(bs * sq, d_model), params["wq"], params["bq"])
        kp = linear_forward(k.reshape(bs * sk, d_model), params["wk"], params["bk"])
        vp = linear_forward(v.reshape(bs * sk, d_model), params["wv"], params["bv"])

    qp = qp.reshape(bs, sq, d_model)           # no head transpose — heads split in-kernel
    kp = kp.reshape(bs, sk, d_model)
    vp = vp.reshape(bs, sk, d_model)

    out_c, sc = attention_forward(qp, kp, vp, heads, d_k, mask)   # concat layout already

    output = linear_forward(out_c.reshape(bs * sq, d_model),
                            params["wo"], params["bo"]).reshape(bs, sq, d_model)
    # TODO(synk): nn.Dropout(p=0.1) on attention probs omitted (eval-mode forward).
    # TODO(synk): for small d_model / short S, fuse projections+attention+output
    # projection into a single pallas_call per batch to remove intermediate HBM traffic.
    return output, sc


# ---------------------------------------------------------------------------
# Pure-JAX f32 reference (same math as the torch module) for correctness checks.
# ---------------------------------------------------------------------------
def _ref_mha(q, k, v, params, heads, mask=None):
    bs, sq, d_model = q.shape
    sk = k.shape[1]
    d_k = d_model // heads

    def lin(x, w, b):
        return jnp.einsum("...i,oi->...o", x, w, precision=_HIGHEST) + b

    qp = lin(q, params["wq"], params["bq"]).reshape(bs, sq, heads, d_k).transpose(0, 2, 1, 3)
    kp = lin(k, params["wk"], params["bk"]).reshape(bs, sk, heads, d_k).transpose(0, 2, 1, 3)
    vp = lin(v, params["wv"], params["bv"]).reshape(bs, sk, heads, d_k).transpose(0, 2, 1, 3)
    s = jnp.einsum("bhqd,bhkd->bhqk", qp, kp, precision=_HIGHEST) / math.sqrt(d_k)
    if mask is not None:
        s = jnp.where(mask[:, None, :, :] == 0, _MASK_FILL, s)
    p = jax.nn.softmax(s, axis=-1)
    o = jnp.einsum("bhqk,bhkd->bhqd", p, vp, precision=_HIGHEST)
    concat = o.transpose(0, 2, 1, 3).reshape(bs, sq, d_model)
    return lin(concat, params["wo"], params["bo"]), p


if __name__ == "__main__":
    B, S, D, H = 2, 8, 32, 4   # batch=2, seq=8, d_model=32, heads=4 (d_k=8)
    key = jax.random.PRNGKey(0)
    keys = jax.random.split(key, 12)
    q = jax.random.normal(keys[0], (B, S, D), jnp.float32)
    k = jax.random.normal(keys[1], (B, S, D), jnp.float32)
    v = jax.random.normal(keys[2], (B, S, D), jnp.float32)
    x = jax.random.normal(keys[3], (B, S, D), jnp.float32)   # self-attention input

    bound = 1.0 / math.sqrt(D)
    def _w(kk): return jax.random.uniform(kk, (D, D), jnp.float32, -bound, bound)
    def _b(kk): return jax.random.uniform(kk, (D,), jnp.float32, -bound, bound)
    params = {
        "wq": _w(keys[4]),  "bq": _b(keys[5]),
        "wk": _w(keys[6]),  "bk": _b(keys[7]),
        "wv": _w(keys[8]),  "bv": _b(keys[9]),
        "wo": _w(keys[10]), "bo": _b(keys[11]),
    }

    # bf16 MXU operands (f32 accumulation) vs f32 HIGHEST reference -> looser tolerance.
    TOL = dict(atol=2e-2, rtol=2e-2)

    # 1) Distinct q/k/v, no mask -> separate-projection path, unmasked kernel.
    out, sc = multi_head_attention_forward(q, k, v, params, H)
    jax.block_until_ready((out, sc))
    out_ref, sc_ref = _ref_mha(q, k, v, params, H)
    assert out.shape == (B, S, D) and sc.shape == (B, H, S, S)
    assert jnp.allclose(out, out_ref, **TOL), float(jnp.max(jnp.abs(out - out_ref)))
    assert jnp.allclose(sc, sc_ref, **TOL), float(jnp.max(jnp.abs(sc - sc_ref)))

    # 2) Self-attention with a causal mask -> fused-QKV path, masked kernel.
    mask = jnp.tril(jnp.ones((B, S, S), jnp.float32))
    out_m, sc_m = multi_head_attention_forward(x, x, x, params, H, mask=mask)
    jax.block_until_ready((out_m, sc_m))
    out_ref_m, sc_ref_m = _ref_mha(x, x, x, params, H, mask=mask)
    assert jnp.allclose(out_m, out_ref_m, **TOL), float(jnp.max(jnp.abs(out_m - out_ref_m)))
    assert jnp.allclose(sc_m, sc_ref_m, **TOL), float(jnp.max(jnp.abs(sc_m - sc_ref_m)))

    print("KERNEL_OK")
</pallas_src>

<mosaic_0001>
module attributes {stable_mosaic.version = 11 : i64} {
  func.func @_linear_kernel(%arg0: i32, %arg1: memref<16x32xf32, #tpu.memory_space<vmem>>, %arg2: memref<32x32xbf16, #tpu.memory_space<vmem>>, %arg3: memref<1x32xf32, #tpu.memory_space<vmem>>, %arg4: memref<16x32xf32, #tpu.memory_space<vmem>>) attributes {dimension_semantics = [#tpu.dimension_semantics<parallel>], iteration_bounds = array<i64: 1>, scalar_prefetch = 0 : i64, scratch_operands = 0 : i64, tpu.core_type = #tpu.core_type<tc>, window_params = [{transform_indices = @transform_0, window_bounds = array<i64: 16, 32>}, {pipeline_mode = #tpu.pipeline_mode<synchronous>, transform_indices = @transform_1, window_bounds = array<i64: 32, 32>}, {pipeline_mode = #tpu.pipeline_mode<synchronous>, transform_indices = @transform_2, window_bounds = array<i64: 1, 32>}, {transform_indices = @transform_3, window_bounds = array<i64: 16, 32>}]} {
    %c0 = arith.constant 0 : index
    %c0_0 = arith.constant 0 : index
    %0 = vector.load %arg1[%c0, %c0_0] : memref<16x32xf32, #tpu.memory_space<vmem>>, vector<16x32xf32>
    %1 = arith.truncf %0 : vector<16x32xf32> to vector<16x32xbf16>
    %c0_1 = arith.constant 0 : index
    %c0_2 = arith.constant 0 : index
    %2 = vector.load %arg2[%c0_1, %c0_2] : memref<32x32xbf16, #tpu.memory_space<vmem>>, vector<32x32xbf16>
    %cst = arith.constant dense<0.000000e+00> : vector<16x32xf32>
    %3 = tpu.matmul %1, %2, %cst {dimension_numbers = #tpu.dot_dimension_numbers<[1], [0], [0], [1], [0, 0, 1, 1], [], []>} : vector<16x32xbf16>, vector<32x32xbf16>, vector<16x32xf32> -> vector<16x32xf32>
    %c0_3 = arith.constant 0 : index
    %c0_4 = arith.constant 0 : index
    %4 = vector.load %arg3[%c0_3, %c0_4] : memref<1x32xf32, #tpu.memory_space<vmem>>, vector<1x32xf32>
    %5 = vector.broadcast %4 : vector<1x32xf32> to vector<16x32xf32>
    %6 = arith.addf %3, %5 : vector<16x32xf32>
    %c0_5 = arith.constant 0 : index
    %c0_6 = arith.constant 0 : index
    %7 = vector.load %arg4[%c0_5, %c0_6] : memref<16x32xf32, #tpu.memory_space<vmem>>, vector<16x32xf32>
    tpu.vector_store %arg4[%c0_5, %c0_6], %6 {strides = array<i32>} : memref<16x32xf32, #tpu.memory_space<vmem>>, vector<16x32xf32>,
    return
  }
  func.func @transform_0(%arg0: i32) -> (i32, i32) {
    %c0_i32 = arith.constant 0 : i32
    %c0_i32_0 = arith.constant 0 : i32
    return %arg0, %c0_i32 : i32, i32
  }
  func.func @transform_1(%arg0: i32) -> (i32, i32) {
    %c0_i32 = arith.constant 0 : i32
    %c0_i32_0 = arith.constant 0 : i32
    %c0_i32_1 = arith.constant 0 : i32
    return %c0_i32, %c0_i32_0 : i32, i32
  }
  func.func @transform_2(%arg0: i32) -> (i32, i32) {
    %c0_i32 = arith.constant 0 : i32
    %c0_i32_0 = arith.constant 0 : i32
    %c0_i32_1 = arith.constant 0 : i32
    return %c0_i32, %c0_i32_0 : i32, i32
  }
  func.func @transform_3(%arg0: i32) -> (i32, i32) {
    %c0_i32 = arith.constant 0 : i32
    %c0_i32_0 = arith.constant 0 : i32
    return %arg0, %c0_i32 : i32, i32
  }
}

</mosaic_0001>

<bundles_post_ra>
// kernel: tpu_custom_call.1
= control target key start
LH: loop header
LB: loop body
LE: loop exit
PB: predicated region body
PF: predicated region fallthrough
CT: control target
= control target key end

     0   :  { %8 = vsyncpa [#allocation3], 0  ;;  %s307_s0 = inlined_call_operand.hbm [shape: f32[16,32], index: 0, kind: input, shape index: {}]   ;;  %s308_s1 = inlined_call_operand.hbm [shape: bf16[32,32], index: 1, kind: input, shape index: {}]   ;;  %s309_s2 = inlined_call_operand.vmem [shape: f32[1,32], index: 2, kind: input, shape index: {}]   ;;  %s310_s3 = inlined_call_operand.hbm [shape: f32[16,32], index: 3, kind: output, shape index: {}]  }
   0x1   :  { %9 = vsyncpa [#allocation6], 0 }
   0x2   :  { %10 = vsyncpa [#allocation4], 0  ;;  %s233_s12 = smov [#allocation2]   ;;  %s161_s16 = scalar_lea.hbm %s307_s0, 256 }
   0x3   :  { %s16_s13 = sshll.u32 %s233_s12, 4  ;;  %p162_p0 = scmp.ne.s32.totalorder %s307_s0, %s161_s16  ;;  %s17_s13 = int_to_ptr.vmem [resolvable:$true] %s16_s13 }
   0x4   :  { %p165_p1 = scmp.lt.u32.totalorder %s161_s16, %s307_s0 }
   0x6   :  { %p167_p2 = pnand %p165_p1, %p162_p0 }
   0x8   :  { %170 = shalt.err (!%p167_p2)
}
   0x9   :  { %s171_s21 = scalar_lea.vmem %s17_s13, 256  ;;  %p176_p4 = scmp.lt.s32.totalorder %s17_s13, %s17_s13 }
   0xa   :  { %p172_p3 = scmp.ne.s32.totalorder %s17_s13, %s171_s21  ;;  %p177_p5 = scmp.lt.s32.totalorder %s171_s21, %s171_s21 }
   0xc   :  { %p178_p6 = por %p177_p5, %p176_p4 }
   0xe   :  { %p179_p7 = pnand %p178_p6, %p172_p3 }
  0x10   :  { %182 = shalt.err (!%p179_p7)
}
  0x11   :  { %s234_s22 = smov 128   ;;  %s235_s23 = smov 8  }
  0x12   :  { %22 = dma.hbm_to_vmem [thread:$0]  %s307_s0, 256, %s17_s13, [#allocation3], %s234_s22, %s234_s22, %s235_s23  }
  0x13   :  { %s236_s26 = smov [#allocation5]   ;;  %s183_s30 = scalar_lea.hbm %s308_s1, 256 }
  0x14   :  { %s28_s27 = sshll.u32 %s236_s26, 4  ;;  %p184_p8 = scmp.ne.s32.totalorder %s308_s1, %s183_s30  ;;  %s29_s27 = int_to_ptr.vmem [resolvable:$true] %s28_s27 }
  0x15   :  { %p187_p9 = scmp.lt.u32.totalorder %s183_s30, %s308_s1 }
  0x17   :  { %p189_p10 = pnand %p187_p9, %p184_p8 }
  0x19   :  { %192 = shalt.err (!%p189_p10)
}
  0x1a   :  { %s193_s8 = scalar_lea.vmem %s29_s27, 256  ;;  %p198_p12 = scmp.lt.s32.totalorder %s29_s27, %s29_s27 }
  0x1b   :  { %p194_p11 = scmp.ne.s32.totalorder %s29_s27, %s193_s8  ;;  %p199_p13 = scmp.lt.s32.totalorder %s193_s8, %s193_s8 }
  0x1d   :  { %p200_p0 = por %p199_p13, %p198_p12 }
  0x1f   :  { %p201_p1 = pnand %p200_p0, %p194_p11 }
  0x21   :  { %204 = shalt.err (!%p201_p1)
}
  0x22   :  { %s237_s0 = smov 64   ;;  %s238_s9 = smov 4  }
  0x23   :  { %34 = dma.hbm_to_vmem [thread:$0]  %s308_s1, 256, %s29_s27, [#allocation6], %s237_s0, %s237_s0, %s238_s9  }
  0x24   :  { %227 = dma.done.wait [#allocation3], 256  }
  0x25   :  { %228 = vsyncadd [#allocation3], 4294967040 }
  0x26   :  { %229 = dma.done.wait [#allocation6], 256  }
  0x27   :  { %230 = vsyncadd [#allocation6], 4294967040  ;;  %v239_v0 = vmov 0.0   ;;  %vm240_vm0 = vmmov 0   ;;  %v159_v1 = vld [vmem:[#allocation5] sm:$0xff]   ;;  %v160_v2 = vld [vmem:[#allocation5 + $0x8] sm:$0xff]  }
  0x28   :  { %142 = vmatprep.subr.bf16.mxu0 %v239_v0  ;;  %146 = vmatprep.mubr.msk.bf16.mxu0 %vm240_vm0, %v239_v0  ;;  %v44_v3 = vld [vmem:[#allocation2] sm:$0xff]  ;;  %v45_v4 = vld [vmem:[#allocation2 + $0x8] sm:$0xff]  ;;  %vm70_vm1 = vcmask 261120   ;;  %s241_s13 = smov [#allocation7]  }
  0x29   :  { %143 = vmatpush3.bf16.msra.mxu0 %v159_v1  ;;  %v46_v5 = vpack.c.bf16 %v45_v4, %v44_v3  ;;  %v135_v6 = vld [vmem:[%s309_s2] ss:$0 sm:$0xff]  ;;  %s122_s14 = sshll.u32 %s241_s13, 4  ;;  %s123_s14 = int_to_ptr.vmem [resolvable:$true] %s122_s14 }
  0x2a   :  { %144 = vmatprep.subr.bf16.mxu0 %v239_v0  ;;  %s205_s15 = scalar_lea.vmem %s123_s14, 256  ;;  %p210_p3 = scmp.lt.s32.totalorder %s123_s14, %s123_s14 }
  0x2b   :  { %p206_p2 = scmp.ne.s32.totalorder %s123_s14, %s205_s15  ;;  %p211_p4 = scmp.lt.s32.totalorder %s205_s15, %s205_s15 }
  0x2d   :  { %145 = vmatpush3.bf16.msra.mxu0 %v160_v2  ;;  %p212_p5 = por %p211_p4, %p210_p3 }
  0x2f   :  { %p213_p6 = pnand %p212_p5, %p206_p2 }
  0x30   :  { %147 = vmatmul.mubr.msk.bf16.vlgmr.msra.gmra.mrb[0].mxu0 %vm70_vm1, %v46_v5 }
 0x103   :  { %v108_v7 = vpop.f32.mrb[0].mxu0 }
 0x104   :  { %v109_v8 = vadd.f32 %v135_v6, %v108_v7  ;;  %v148_v9 = vpop.f32.mrb[1].mxu0 }
 0x105   :  { %v111_v10 = vpop.f32.mrb[2].mxu0 }
 0x106   :  { %115 = vst.msk [vmem:[#allocation7] sm:$0xff] %vm70_vm1, %v109_v8  ;;  %v112_v11 = vadd.f32 %v135_v6, %v111_v10  ;;  %v149_v12 = vpop.f32.mrb[3].mxu0 }
 0x108   :  { %116 = vst.msk [vmem:[#allocation7 + $0x8] sm:$0xff] %vm70_vm1, %v112_v11 }
 0x109   :  { %216 = shalt.err (!%p213_p6)
}
 0x10a   :  { %s217_s17 = scalar_lea.hbm %s310_s3, 256 }
 0x10b   :  { %p218_p7 = scmp.ne.s32.totalorder %s310_s3, %s217_s17  ;;  %p221_p8 = scmp.lt.u32.totalorder %s217_s17, %s310_s3 }
 0x10d   :  { %p223_p9 = pnand %p221_p8, %p218_p7 }
 0x10f   :  { %226 = shalt.err (!%p223_p9)
}
 0x110   :  { %128 = dma.vmem_to_hbm [thread:$0]  %s123_s14, 256, %s310_s3, [#allocation4], %s234_s22, %s234_s22, %s235_s23  }
 0x111   :  { %231 = dma.done.wait [#allocation4], 256  }
 0x112   :  { %232 = vsyncadd [#allocation4], 4294967040 }
 0x113   :  { %132 = vsyncpa [#allocation3], 1 }
 0x114   :  { %133 = vsyncpa [#allocation6], 1 }
 0x115   :  { %134 = vsyncpa [#allocation4], 1 }

</bundles_post_ra>
